<compile_context>
chip_gen: v5e
topology: v5e:2x2
jax: 0.10.0
libtpu: 0.0.40
codegen_flags: <defaults>
</compile_context>

<pallas_src>
import functools

import jax
import jax.numpy as jnp
from jax import lax
from jax.experimental import pallas as pl
from jax.experimental.pallas import tpu as pltpu

TN = 512     # points processed per grid step (amortizes ~0.35us/step overhead)
SLAB = 128   # inner slab so the one-hot stays (128, M) and fits in vregs


def _scatter_sum_kernel(seg_ref, feat_ref, out_ref, *, num_slabs):
    """Per-voxel feature-sum (+count) via one-hot matmuls on the MXU.

    seg_ref : (TN, 1)       int32 per-point voxel slot, -1 => drop (padding)
    feat_ref: (C_pad, TN)   f32 channel-major point features; one row is all
                            ones (count channel), trailing rows are zero pad
    out_ref : (C_pad, M)    f32 partial per-voxel sums for this parallel shard
                            (block is resident across the inner grid axis)
    """
    step = pl.program_id(1)

    @pl.when(step == 0)
    def _():
        out_ref[...] = jnp.zeros_like(out_ref)

    m = out_ref.shape[1]

    def slab(s, acc):
        start = pl.multiple_of(s * SLAB, SLAB)
        seg = seg_ref[pl.ds(start, SLAB), :]            # (SLAB, 1) int32
        feat = feat_ref[:, pl.ds(start, SLAB)]          # (C_pad, SLAB) f32
        vox = lax.broadcasted_iota(jnp.int32, (SLAB, m), 1)
        onehot = (seg == vox).astype(jnp.float32)       # (SLAB, M); -1 / oob never match
        # scatter-add == (C_pad, SLAB) @ (SLAB, M) on the MXU (counts are the
        # ones-row of feat, so no separate reduce/transpose is needed).
        return acc + jnp.dot(feat, onehot, preferred_element_type=jnp.float32)

    acc = lax.fori_loop(0, num_slabs, slab,
                        jnp.zeros(out_ref.shape, jnp.float32), unroll=True)
    out_ref[...] += acc


def _scatter_mean(features, seg_ids, max_voxels, *, num_partials=2):
    """features: (N, C) f32, seg_ids: (N,) int32 in [-1, max_voxels).

    Returns (max_voxels, C) f32 per-voxel means (empty slots are zero).
    """
    n, c = features.shape
    m = max(int(max_voxels), 1)
    m_tot = m + ((-m) % 128)                 # lane-dense output width

    c_aug = c + 1                            # +1 ones-channel for the counts
    c_tot = c_aug + ((-c_aug) % 8)           # pad channel rows to sublane tile

    chunk = num_partials * TN
    n_pad = (-n) % chunk
    n_tot = n + n_pad
    steps = n_tot // chunk                   # inner (reduction) grid extent

    ones = jnp.ones((n, 1), jnp.float32)
    feat_aug = jnp.concatenate([features.astype(jnp.float32), ones], axis=1)
    feat_cm = jnp.pad(feat_aug.T, ((0, c_tot - c_aug), (0, n_pad)))  # (C_pad, n_tot)
    seg_col = jnp.pad(seg_ids.astype(jnp.int32), ((0, n_pad),),
                      constant_values=-1).reshape(-1, 1)             # (n_tot, 1)

    partials = pl.pallas_call(
        functools.partial(_scatter_sum_kernel, num_slabs=TN // SLAB),
        out_shape=jax.ShapeDtypeStruct((num_partials, c_tot, m_tot), jnp.float32),
        grid_spec=pltpu.PrefetchScalarGridSpec(
            num_scalar_prefetch=0,
            grid=(num_partials, steps),
            in_specs=[
                pl.BlockSpec((TN, 1), lambda p, i: (p * steps + i, 0)),
                pl.BlockSpec((c_tot, TN), lambda p, i: (0, p * steps + i)),
            ],
            out_specs=pl.BlockSpec((None, c_tot, m_tot), lambda p, i: (p, 0, 0)),
        ),
        compiler_params=pltpu.CompilerParams(
            dimension_semantics=("parallel", "arbitrary")),
    )(seg_col, feat_cm)

    # Tiny exact epilogue: combine per-core partials, divide sums by counts.
    totals = jnp.sum(partials, axis=0)                   # (C_pad, M_tot)
    counts = totals[c]                                   # ones-channel row
    means = totals[:c] / jnp.maximum(counts, 1.0)[None, :]
    return means[:, :m].T                                # (M, C)


class DynamicSimpleVFE:
    """JAX/Pallas port of mmdet3d DynamicSimpleVFE (mean DynamicScatter)."""

    def __init__(self,
                 voxel_size=(0.2, 0.2, 4),
                 point_cloud_range=(0, -40, -3, 70.4, 40, 1),
                 max_voxels=128,
                 num_partials=2):
        self.voxel_size = voxel_size
        self.point_cloud_range = point_cloud_range
        self.max_voxels = max_voxels
        self.num_partials = num_partials  # 2 => both TensorCores on v7x
        # grid dims (same convention as DynamicScatter / Voxelization)
        self.nx = int(round((point_cloud_range[3] - point_cloud_range[0]) / voxel_size[0]))
        self.ny = int(round((point_cloud_range[4] - point_cloud_range[1]) / voxel_size[1]))
        self.nz = int(round((point_cloud_range[5] - point_cloud_range[2]) / voxel_size[2]))
        self.fp16_enabled = False  # matches PyTorch module default (no fp16 cast)

    @functools.partial(jax.jit, static_argnums=0)
    def __call__(self, features, coors):
        """features: (N, C) float; coors: (N, 4) int32 [batch, z, y, x].

        Returns:
          voxel_features: (max_voxels, C) float32 (mean of points per voxel)
          voxel_coors:    (max_voxels, 4) int32, -1 filled for unused slots
          num_voxels:     () int32, number of valid voxels
          overflowed:     () bool, True if the true number of occupied voxels
                          exceeded the static capacity (means may be corrupted)
        """
        coors = coors.astype(jnp.int32)
        nx, ny, nz = self.nx, self.ny, self.nz
        sentinel = jnp.iinfo(jnp.int32).max

        valid = jnp.all(coors >= 0, axis=1)  # DynamicScatter drops coor==-1 points
        lin = ((coors[:, 0] * nz + coors[:, 1]) * ny + coors[:, 2]) * nx + coors[:, 3]
        lin = jnp.where(valid, lin, sentinel)

        # Unique voxels (sorted order; true M is dynamic, so use a static
        # capacity with a valid count + overflow flag).
        uniq, inverse = jnp.unique(lin, return_inverse=True,
                                   size=self.max_voxels, fill_value=sentinel)
        seg_ids = jnp.where(valid, inverse.reshape(-1).astype(jnp.int32), -1)

        # Pallas kernel: per-voxel mean reduction (the hot path).
        voxel_features = _scatter_mean(features, seg_ids, self.max_voxels,
                                       num_partials=self.num_partials)

        # Decode voxel coordinates back from the linear ids.
        slot_valid = uniq != sentinel
        safe = jnp.where(slot_valid, uniq, 0)
        b = safe // (nz * ny * nx)
        r = safe % (nz * ny * nx)
        z = r // (ny * nx)
        r = r % (ny * nx)
        y = r // nx
        x = r % nx
        voxel_coors = jnp.stack([b, z, y, x], axis=1).astype(jnp.int32)
        voxel_coors = jnp.where(slot_valid[:, None], voxel_coors, -1)
        num_voxels = jnp.sum(slot_valid.astype(jnp.int32))

        # Overflow detection: true number of distinct valid voxel ids vs. the
        # number of slots that were actually assigned.
        sorted_lin = jnp.sort(lin)
        is_new = jnp.concatenate(
            [jnp.ones((1,), dtype=bool), sorted_lin[1:] != sorted_lin[:-1]])
        num_distinct_valid = jnp.sum(
            (is_new & (sorted_lin != sentinel)).astype(jnp.int32))
        overflowed = num_distinct_valid > num_voxels

        # TODO(synk): the true op returns exactly M (dynamic) voxels; here M is
        # a static capacity `max_voxels` with a `num_voxels` valid count.
        return voxel_features, voxel_coors, num_voxels, overflowed


def _reference_scatter_mean(features, coors, nx, ny, nz, max_voxels):
    """Pure-JAX reference for correctness checking."""
    sentinel = jnp.iinfo(jnp.int32).max
    valid = jnp.all(coors >= 0, axis=1)
    lin = ((coors[:, 0] * nz + coors[:, 1]) * ny + coors[:, 2]) * nx + coors[:, 3]
    lin = jnp.where(valid, lin, sentinel)
    uniq, inv = jnp.unique(lin, return_inverse=True, size=max_voxels,
                           fill_value=sentinel)
    inv = inv.reshape(-1)
    seg = jnp.where(valid, inv, max_voxels)  # dump invalid into extra bucket
    sums = jax.ops.segment_sum(features.astype(jnp.float32), seg,
                               num_segments=max_voxels + 1)[:max_voxels]
    cnts = jax.ops.segment_sum(jnp.ones((features.shape[0],), jnp.float32), seg,
                               num_segments=max_voxels + 1)[:max_voxels]
    return sums / jnp.maximum(cnts, 1.0)[:, None]


if __name__ == "__main__":
    key = jax.random.PRNGKey(0)
    k1, k2, k3, k4 = jax.random.split(key, 4)

    N, C = 200, 4          # points, feature channels (x, y, z, intensity)
    MAX_VOXELS = 128

    features = jax.random.normal(k1, (N, C), dtype=jnp.float32)
    # voxel coords [batch, z, y, x] chosen small so many points share a voxel
    batch = jax.random.randint(k2, (N, 1), 0, 2)
    zc = jnp.zeros((N, 1), jnp.int32)
    yc = jax.random.randint(k3, (N, 1), 0, 8)
    xc = jax.random.randint(k4, (N, 1), 0, 8)
    coors = jnp.concatenate([batch, zc, yc, xc], axis=1).astype(jnp.int32)

    vfe = DynamicSimpleVFE(max_voxels=MAX_VOXELS)
    voxel_feats, voxel_coors, num_voxels, overflowed = vfe(features, coors)
    jax.block_until_ready((voxel_feats, voxel_coors, num_voxels, overflowed))

    ref = _reference_scatter_mean(features, coors, vfe.nx, vfe.ny, vfe.nz,
                                  MAX_VOXELS)
    assert voxel_feats.shape == (MAX_VOXELS, C)
    assert voxel_coors.shape == (MAX_VOXELS, 4)
    assert not bool(overflowed), "voxel capacity overflow"
    assert jnp.allclose(voxel_feats, ref, atol=1e-4, rtol=1e-4), "mismatch vs reference"
    assert int(num_voxels) > 0

    print("KERNEL_OK")
</pallas_src>

<mosaic_0001>
module attributes {stable_mosaic.version = 11 : i64} {
  func.func @_scatter_sum_kernel(%arg0: i32, %arg1: i32, %arg2: memref<512x1xi32, #tpu.memory_space<vmem>>, %arg3: memref<8x512xf32, #tpu.memory_space<vmem>>, %arg4: memref<1x8x128xf32, #tpu.memory_space<vmem>>) attributes {dimension_semantics = [#tpu.dimension_semantics<parallel>, #tpu.dimension_semantics<arbitrary>], iteration_bounds = array<i64: 2, 1>, scalar_prefetch = 0 : i64, scratch_operands = 0 : i64, tpu.core_type = #tpu.core_type<tc>, window_params = [{transform_indices = @transform_0, window_bounds = array<i64: 512, 1>}, {transform_indices = @transform_1, window_bounds = array<i64: 8, 512>}, {transform_indices = @transform_2, window_bounds = array<i64: 1, 8, 128>}]} {
    %c0_i32 = arith.constant 0 : i32
    %0 = arith.cmpi eq, %arg1, %c0_i32 : i32
    %1 = arith.extui %0 : i1 to i32
    %c0_i32_0 = arith.constant 0 : i32
    %2 = arith.cmpi ne, %1, %c0_i32_0 : i32
    scf.if %2 {
      %cst_22 = arith.constant 0.000000e+00 : f32
      %62 = vector.broadcast %cst_22 : f32 to vector<8x128xf32>
      %c0_23 = arith.constant 0 : index
      %c0_24 = arith.constant 0 : index
      %c0_25 = arith.constant 0 : index
      %63 = vector.load %arg4[%c0_23, %c0_24, %c0_25] : memref<1x8x128xf32, #tpu.memory_space<vmem>>, vector<1x8x128xf32>
      %64 = vector.shape_cast %63 : vector<1x8x128xf32> to vector<8x128xf32>
      %65 = vector.shape_cast %62 : vector<8x128xf32> to vector<1x8x128xf32>
      tpu.vector_store %arg4[%c0_23, %c0_24, %c0_25], %65 {strides = array<i32>} : memref<1x8x128xf32, #tpu.memory_space<vmem>>, vector<1x8x128xf32>,
    } else {
    }
    %cst = arith.constant 0.000000e+00 : f32
    %3 = vector.broadcast %cst : f32 to vector<8x128xf32>
    %c0_i32_1 = arith.constant 0 : i32
    %c128_i32 = arith.constant 128 : i32
    %4 = arith.muli %c0_i32_1, %c128_i32 : i32
    %5 = tpu.assume_multiple %4, 128 : i32
    %6 = arith.index_cast %5 : i32 to index
    %c0 = arith.constant 0 : index
    %7 = vector.load %arg2[%6, %c0] : memref<512x1xi32, #tpu.memory_space<vmem>>, vector<128x1xi32>
    %c0_2 = arith.constant 0 : index
    %8 = arith.index_cast %5 : i32 to index
    %9 = vector.load %arg3[%c0_2, %8] : memref<8x512xf32, #tpu.memory_space<vmem>>, vector<8x128xf32>
    %10 = tpu.iota {dimensions = array<i32: 1>} : vector<128x128xi32>
    %11 = vector.broadcast %7 : vector<128x1xi32> to vector<128x128xi32>
    %12 = arith.cmpi eq, %11, %10 : vector<128x128xi32>
    %13 = arith.extui %12 : vector<128x128xi1> to vector<128x128xi32>
    %14 = arith.sitofp %13 : vector<128x128xi32> to vector<128x128xf32>
    %cst_3 = arith.constant dense<0.000000e+00> : vector<8x128xf32>
    %15 = tpu.matmul %9, %14, %cst_3 {dimension_numbers = #tpu.dot_dimension_numbers<[1], [0], [0], [1], [0, 0, 1, 1], [], []>} : vector<8x128xf32>, vector<128x128xf32>, vector<8x128xf32> -> vector<8x128xf32>
    %16 = arith.addf %3, %15 : vector<8x128xf32>
    %c1_i32 = arith.constant 1 : i32
    %c128_i32_4 = arith.constant 128 : i32
    %17 = arith.muli %c1_i32, %c128_i32_4 : i32
    %18 = tpu.assume_multiple %17, 128 : i32
    %19 = arith.index_cast %18 : i32 to index
    %c0_5 = arith.constant 0 : index
    %20 = vector.load %arg2[%19, %c0_5] : memref<512x1xi32, #tpu.memory_space<vmem>>, vector<128x1xi32>
    %c0_6 = arith.constant 0 : index
    %21 = arith.index_cast %18 : i32 to index
    %22 = vector.load %arg3[%c0_6, %21] : memref<8x512xf32, #tpu.memory_space<vmem>>, vector<8x128xf32>
    %23 = tpu.iota {dimensions = array<i32: 1>} : vector<128x128xi32>
    %24 = vector.broadcast %20 : vector<128x1xi32> to vector<128x128xi32>
    %25 = arith.cmpi eq, %24, %23 : vector<128x128xi32>
    %26 = arith.extui %25 : vector<128x128xi1> to vector<128x128xi32>
    %27 = arith.sitofp %26 : vector<128x128xi32> to vector<128x128xf32>
    %cst_7 = arith.constant dense<0.000000e+00> : vector<8x128xf32>
    %28 = tpu.matmul %22, %27, %cst_7 {dimension_numbers = #tpu.dot_dimension_numbers<[1], [0], [0], [1], [0, 0, 1, 1], [], []>} : vector<8x128xf32>, vector<128x128xf32>, vector<8x128xf32> -> vector<8x128xf32>
    %29 = arith.addf %16, %28 : vector<8x128xf32>
    %c2_i32 = arith.constant 2 : i32
    %c128_i32_8 = arith.constant 128 : i32
    %30 = arith.muli %c2_i32, %c128_i32_8 : i32
    %31 = tpu.assume_multiple %30, 128 : i32
    %32 = arith.index_cast %31 : i32 to index
    %c0_9 = arith.constant 0 : index
    %33 = vector.load %arg2[%32, %c0_9] : memref<512x1xi32, #tpu.memory_space<vmem>>, vector<128x1xi32>
    %c0_10 = arith.constant 0 : index
    %34 = arith.index_cast %31 : i32 to index
    %35 = vector.load %arg3[%c0_10, %34] : memref<8x512xf32, #tpu.memory_space<vmem>>, vector<8x128xf32>
    %36 = tpu.iota {dimensions = array<i32: 1>} : vector<128x128xi32>
    %37 = vector.broadcast %33 : vector<128x1xi32> to vector<128x128xi32>
    %38 = arith.cmpi eq, %37, %36 : vector<128x128xi32>
    %39 = arith.extui %38 : vector<128x128xi1> to vector<128x128xi32>
    %40 = arith.sitofp %39 : vector<128x128xi32> to vector<128x128xf32>
    %cst_11 = arith.constant dense<0.000000e+00> : vector<8x128xf32>
    %41 = tpu.matmul %35, %40, %cst_11 {dimension_numbers = #tpu.dot_dimension_numbers<[1], [0], [0], [1], [0, 0, 1, 1], [], []>} : vector<8x128xf32>, vector<128x128xf32>, vector<8x128xf32> -> vector<8x128xf32>
    %42 = arith.addf %29, %41 : vector<8x128xf32>
    %c3_i32 = arith.constant 3 : i32
    %c128_i32_12 = arith.constant 128 : i32
    %43 = arith.muli %c3_i32, %c128_i32_12 : i32
    %44 = tpu.assume_multiple %43, 128 : i32
    %45 = arith.index_cast %44 : i32 to index
    %c0_13 = arith.constant 0 : index
    %46 = vector.load %arg2[%45, %c0_13] : memref<512x1xi32, #tpu.memory_space<vmem>>, vector<128x1xi32>
    %c0_14 = arith.constant 0 : index
    %47 = arith.index_cast %44 : i32 to index
    %48 = vector.load %arg3[%c0_14, %47] : memref<8x512xf32, #tpu.memory_space<vmem>>, vector<8x128xf32>
    %49 = tpu.iota {dimensions = array<i32: 1>} : vector<128x128xi32>
    %50 = vector.broadcast %46 : vector<128x1xi32> to vector<128x128xi32>
    %51 = arith.cmpi eq, %50, %49 : vector<128x128xi32>
    %52 = arith.extui %51 : vector<128x128xi1> to vector<128x128xi32>
    %53 = arith.sitofp %52 : vector<128x128xi32> to vector<128x128xf32>
    %cst_15 = arith.constant dense<0.000000e+00> : vector<8x128xf32>
    %54 = tpu.matmul %48, %53, %cst_15 {dimension_numbers = #tpu.dot_dimension_numbers<[1], [0], [0], [1], [0, 0, 1, 1], [], []>} : vector<8x128xf32>, vector<128x128xf32>, vector<8x128xf32> -> vector<8x128xf32>
    %55 = arith.addf %42, %54 : vector<8x128xf32>
    %c4_i32 = arith.constant 4 : i32
    %c0_16 = arith.constant 0 : index
    %c0_17 = arith.constant 0 : index
    %c0_18 = arith.constant 0 : index
    %56 = vector.load %arg4[%c0_16, %c0_17, %c0_18] : memref<1x8x128xf32, #tpu.memory_space<vmem>>, vector<1x8x128xf32>
    %57 = vector.shape_cast %56 : vector<1x8x128xf32> to vector<8x128xf32>
    %58 = arith.addf %57, %55 : vector<8x128xf32>
    %c0_19 = arith.constant 0 : index
    %c0_20 = arith.constant 0 : index
    %c0_21 = arith.constant 0 : index
    %59 = vector.load %arg4[%c0_19, %c0_20, %c0_21] : memref<1x8x128xf32, #tpu.memory_space<vmem>>, vector<1x8x128xf32>
    %60 = vector.shape_cast %59 : vector<1x8x128xf32> to vector<8x128xf32>
    %61 = vector.shape_cast %58 : vector<8x128xf32> to vector<1x8x128xf32>
    tpu.vector_store %arg4[%c0_19, %c0_20, %c0_21], %61 {strides = array<i32>} : memref<1x8x128xf32, #tpu.memory_space<vmem>>, vector<1x8x128xf32>,
    return
  }
  func.func @transform_0(%arg0: i32, %arg1: i32) -> (i32, i32) {
    %c1_i32 = arith.constant 1 : i32
    %0 = arith.muli %arg0, %c1_i32 : i32
    %1 = arith.addi %0, %arg1 : i32
    %c0_i32 = arith.constant 0 : i32
    %c0_i32_0 = arith.constant 0 : i32
    return %1, %c0_i32 : i32, i32
  }
  func.func @transform_1(%arg0: i32, %arg1: i32) -> (i32, i32) {
    %c1_i32 = arith.constant 1 : i32
    %0 = arith.muli %arg0, %c1_i32 : i32
    %1 = arith.addi %0, %arg1 : i32
    %c0_i32 = arith.constant 0 : i32
    %c0_i32_0 = arith.constant 0 : i32
    return %c0_i32, %1 : i32, i32
  }
  func.func @transform_2(%arg0: i32, %arg1: i32) -> (i32, i32, i32) {
    %c0_i32 = arith.constant 0 : i32
    %c0_i32_0 = arith.constant 0 : i32
    %c0_i32_1 = arith.constant 0 : i32
    return %arg0, %c0_i32, %c0_i32_0 : i32, i32, i32
  }
}

</mosaic_0001>

<bundles_post_ra>
// kernel: a_call__.1
= control target key start
LH: loop header
LB: loop body
LE: loop exit
PB: predicated region body
PF: predicated region fallthrough
CT: control target
= control target key end

     0   :  { %s1077_s9 = smov 0   ;;  %s1079_s10 = smov 0   ;;  %s1381_s0 = inlined_call_operand.vmem [shape: s32[1024,1], index: 0, kind: input, shape index: {}]   ;;  %s1382_s1 = inlined_call_operand.vmem [shape: f32[8,1024], index: 1, kind: input, shape index: {}]   ;;  %s1383_s2 = inlined_call_operand.vmem [shape: f32[2,8,128], index: 2, kind: output, shape index: {}]  }
   0x1   :  { %s1081_s11 = smov 0  }
   0x2 LB: > { %s24_s12 = sadd.s32 1, %s1054_s10  ;;  %p819_p0 = scmp.ge.s32.totalorder %s1058_s11, 1  ;;  %s1058_s11 = sphi %s1081_s11, %s12_s11   ;;  %s1054_s10 = sphi %s1079_s10, %s1385_s10   ;;  %s1050_s9 = sphi %s1077_s9, %s1384_s9  }
   0x3   : > { %p26_p1 = scmp.ge.s32.totalorder %s24_s12, 2  ;;  %p144_p2 = scmp.lt.s32.totalorder %s1058_s11, 3 }
   0x5   : > { %s1387_s12 = smov (%p26_p1, %s24_s12), 0  ;;  %p145_p3 = pnand %p819_p0, %p144_p2 }
   0x6   : > { %s820_s13 = sshll.u32 (!%p145_p3), %s1050_s9, 6  ;;  %s822_s18 = sshll.u32 (!%p145_p3), %s1050_s9, 2 }
   0x7   : > { %148 = sbr.rel (%p145_p3) target bundleno = 437 (0x1b5), region = 28  ;;  %p174_p4 = scmp.lt.s32.totalorder (!%p145_p3), %s820_s13, 127 }
   0x8   : > { %p182_p5 = scmp.lt.s32.totalorder (!%p145_p3), %s822_s18, 7  ;;  %p188_p6 = scmp.lt.s32.totalorder (!%p145_p3), %s1050_s9, 1 }
   0xc   : > { %v1060_v0 = vmov 0   ;;  %s1389_s13 = smov (!%p174_p4, %s820_s13), 127  ;;  %s1391_s18 = smov (!%p182_p5, %s822_s18), 7 }
   0xd   : > { %1035 = vset.pattern.permute.xlu2 %v1060_v0  ;;  %1034 = vset.pattern.permute.xlu1 %v1060_v0  ;;  %s821_s14 = sshll.u32 %s1389_s13, 3  ;;  %s823_s19 = sshll.u32 %s1391_s18, 3 }
   0xe   : > { %1033 = vset.pattern.permute.xlu0 %v1060_v0  ;;  %s1101_s17 = scalar_lea.vmem %s1381_s0, %s821_s14  ;;  %s1339_s22 = scalar_lea.vmem %s1382_s1, %s823_s19 }
   0xf   : > { %v201_v1 = vld [vmem:[%s1101_s17 + $0x20] sm:$0xff]  ;;  %v199_v2 = vld [vmem:[%s1101_s17 + $0x10] sm:$0xff]  ;;  %v202_v4 = vld [vmem:[%s1101_s17 + $0x28] sm:$0xff]  ;;  %s1393_s9 = smov (!%p188_p6, %s1050_s9), 1 }
  0x10   : > { %v197_v3 = vld [vmem:[%s1101_s17] sm:$0xff]  ;;  %229 = vperm.xlu2 %1035, %v201_v1   ;;  %223 = vperm.xlu1 %1034, %v199_v2   ;;  %v200_v5 = vld [vmem:[%s1101_s17 + $0x18] sm:$0xff]  ;;  %v198_v6 = vld [vmem:[%s1101_s17 + $0x8] sm:$0xff]  ;;  %s824_s23 = sshll.u32 %s1393_s9, 3 }
  0x11   : > { %217 = vperm.xlu0 %1033, %v197_v3   ;;  %v205_v7 = vld [vmem:[%s1101_s17 + $0x40] sm:$0xff]  ;;  %v204_v8 = vld [vmem:[%s1101_s17 + $0x38] sm:$0xff]  ;;  %v203_v9 = vld [vmem:[%s1101_s17 + $0x30] sm:$0xff]  ;;  %s191_s26 = scalar_lea.vmem %s1383_s2, %s824_s23 }
  0x12   : > { %v208_v10 = vld [vmem:[%s1101_s17 + $0x58] sm:$0xff]  ;;  %v207_v11 = vld [vmem:[%s1101_s17 + $0x50] sm:$0xff]  ;;  %v206_v12 = vld [vmem:[%s1101_s17 + $0x48] sm:$0xff] }
  0x13   : > { %v211_v13 = vld [vmem:[%s1101_s17 + $0x70] sm:$0xff]  ;;  %v210_v14 = vld [vmem:[%s1101_s17 + $0x68] sm:$0xff]  ;;  %v209_v15 = vld [vmem:[%s1101_s17 + $0x60] sm:$0xff] }
  0x14   : > { %v842_v16 = vld [vmem:[%s1101_s17 + $0x88] sm:$0xff]  ;;  %v841_v17 = vld [vmem:[%s1101_s17 + $0x80] sm:$0xff]  ;;  %v212_v18 = vld [vmem:[%s1101_s17 + $0x78] sm:$0xff] }
  0x15   : > { %v845_v19 = vld [vmem:[%s1101_s17 + $0xa0] sm:$0xff]  ;;  %v844_v20 = vld [vmem:[%s1101_s17 + $0x98] sm:$0xff]  ;;  %v843_v21 = vld [vmem:[%s1101_s17 + $0x90] sm:$0xff] }
  0x16   : > { %v848_v22 = vld [vmem:[%s1101_s17 + $0xb8] sm:$0xff]  ;;  %v847_v23 = vld [vmem:[%s1101_s17 + $0xb0] sm:$0xff]  ;;  %v846_v24 = vld [vmem:[%s1101_s17 + $0xa8] sm:$0xff] }
  0x17   : > { %v851_v25 = vld [vmem:[%s1101_s17 + $0xd0] sm:$0xff]  ;;  %v850_v26 = vld [vmem:[%s1101_s17 + $0xc8] sm:$0xff]  ;;  %v849_v27 = vld [vmem:[%s1101_s17 + $0xc0] sm:$0xff] }
  0x18   : > { %232 = vperm.xlu2 %1035, %v202_v4   ;;  %226 = vperm.xlu1 %1034, %v200_v5   ;;  %v854_v28 = vld [vmem:[%s1101_s17 + $0xe8] sm:$0xff]  ;;  %v853_v29 = vld [vmem:[%s1101_s17 + $0xe0] sm:$0xff]  ;;  %v852_v30 = vld [vmem:[%s1101_s17 + $0xd8] sm:$0xff] }
  0x19   : > { %220 = vperm.xlu0 %1033, %v198_v6   ;;  %v970_v31 = vld [vmem:[%s1101_s17 + $0x1f8] sm:$0xff]  ;;  %v920_v32 = vld [vmem:[%s1101_s17 + $0x170] sm:$0xff]  ;;  %v919_v35 = vld [vmem:[%s1101_s17 + $0x168] sm:$0xff] }
  0x1a   : > { %v921_v33 = vld [vmem:[%s1101_s17 + $0x178] sm:$0xff]  ;;  %v969_v34 = vld [vmem:[%s1101_s17 + $0x1f0] sm:$0xff]  ;;  %v968_v38 = vld [vmem:[%s1101_s17 + $0x1e8] sm:$0xff] }
  0x1b   : > { %v856_v36 = vld [vmem:[%s1101_s17 + $0xf8] sm:$0xff]  ;;  %v918_v39 = vld [vmem:[%s1101_s17 + $0x160] sm:$0xff]  ;;  %v855_v40 = vld [vmem:[%s1101_s17 + $0xf0] sm:$0xff] }
  0x1c   : > { %v916_v42 = vld [vmem:[%s1101_s17 + $0x150] sm:$0xff]  ;;  %v967_v43 = vld [vmem:[%s1101_s17 + $0x1e0] sm:$0xff]  ;;  %v917_v44 = vld [vmem:[%s1101_s17 + $0x158] sm:$0xff] }
  0x1d   : > { %v965_v46 = vld [vmem:[%s1101_s17 + $0x1d0] sm:$0xff]  ;;  %v915_v47 = vld [vmem:[%s1101_s17 + $0x148] sm:$0xff]  ;;  %v966_v48 = vld [vmem:[%s1101_s17 + $0x1d8] sm:$0xff] }
  0x1e   : > { %v913_v52 = vld [vmem:[%s1101_s17 + $0x138] sm:$0xff]  ;;  %v964_v53 = vld [vmem:[%s1101_s17 + $0x1c8] sm:$0xff]  ;;  %v914_v54 = vld [vmem:[%s1101_s17 + $0x140] sm:$0xff] }
  0x1f   : > { %v962_v58 = vld [vmem:[%s1101_s17 + $0x1b8] sm:$0xff]  ;;  %v912_v59 = vld [vmem:[%s1101_s17 + $0x130] sm:$0xff]  ;;  %v963_v60 = vld [vmem:[%s1101_s17 + $0x1c0] sm:$0xff] }
  0x20   : > { %241 = vperm.xlu2 %1035, %v205_v7   ;;  %238 = vperm.xlu1 %1034, %v204_v8   ;;  %v910_v0 = vld [vmem:[%s1101_s17 + $0x120] sm:$0xff]  ;;  %v961_v1 = vld [vmem:[%s1101_s17 + $0x1b0] sm:$0xff]  ;;  %v911_v2 = vld [vmem:[%s1101_s17 + $0x128] sm:$0xff] }
  0x21   : > { %235 = vperm.xlu0 %1033, %v203_v9   ;;  %v959_v6 = vld [vmem:[%s1101_s17 + $0x1a0] sm:$0xff]  ;;  %v909_v7 = vld [vmem:[%s1101_s17 + $0x118] sm:$0xff]  ;;  %v960_v8 = vld [vmem:[%s1101_s17 + $0x1a8] sm:$0xff] }
  0x28   : > { %250 = vperm.xlu2 %1035, %v208_v10   ;;  %247 = vperm.xlu1 %1034, %v207_v11  }
  0x29   : > { %244 = vperm.xlu0 %1033, %v206_v12   ;;  %v907_v12 = vld [vmem:[%s1101_s17 + $0x108] sm:$0xff] }
  0x30   : > { %259 = vperm.xlu2 %1035, %v211_v13   ;;  %256 = vperm.xlu1 %1034, %v210_v14   ;;  %v958_v13 = vld [vmem:[%s1101_s17 + $0x198] sm:$0xff]  ;;  %v214_v14 = vlaneseq }
  0x31   : > { %253 = vperm.xlu0 %1033, %v209_v15   ;;  %v908_v15 = vld [vmem:[%s1101_s17 + $0x110] sm:$0xff] }
  0x38   : > { %335 = vperm.xlu2 %1035, %v842_v16   ;;  %332 = vperm.xlu1 %1034, %v841_v17   ;;  %v1189_v16 = vand.u32 127, %v214_v14 }
  0x39   : > { %262 = vperm.xlu0 %1033, %v212_v18  }
  0x40   : > { %344 = vperm.xlu2 %1035, %v845_v19   ;;  %341 = vperm.xlu1 %1034, %v844_v20   ;;  %v1061_v20 = vmov 1.0  }
  0x41   : > { %338 = vperm.xlu0 %1033, %v843_v21   ;;  %v956_v21 = vld [vmem:[%s1101_s17 + $0x188] sm:$0xff] }
  0x48   : > { %353 = vperm.xlu2 %1035, %v848_v22   ;;  %350 = vperm.xlu1 %1034, %v847_v23   ;;  %v906_v22 = vld [vmem:[%s1101_s17 + $0x100] sm:$0xff]  ;;  %v957_v23 = vld [vmem:[%s1101_s17 + $0x190] sm:$0xff] }
  0x49   : > { %347 = vperm.xlu0 %1033, %v846_v24  }
  0x50   : > { %362 = vperm.xlu2 %1035, %v851_v25   ;;  %359 = vperm.xlu1 %1034, %v850_v26  }
  0x51   : > { %356 = vperm.xlu0 %1033, %v849_v27   ;;  %v955_v27 = vld [vmem:[%s1101_s17 + $0x180] sm:$0xff] }
  0x58   : > { %371 = vperm.xlu2 %1035, %v854_v28   ;;  %368 = vperm.xlu1 %1034, %v853_v29  }
  0x59   : > { %365 = vperm.xlu0 %1033, %v852_v30  }
  0x60   : > { %668 = vperm.xlu2 %1035, %v970_v31   ;;  %529 = vperm.xlu1 %1034, %v920_v32  }
  0x61   : > { %532 = vperm.xlu0 %1033, %v921_v33  }
  0x68   : > { %665 = vperm.xlu2 %1035, %v969_v34   ;;  %526 = vperm.xlu1 %1034, %v919_v35  }
  0x69   : > { %377 = vperm.xlu0 %1033, %v856_v36  }
  0x6a   : > { %v1139_v37 = vpop.permute.xlu2 %229 }
  0x6b   : > { %vm268_vm12 = vcmp.eq.s32.totalorder %v1139_v37, %v1189_v16 }
  0x70   : > { %662 = vperm.xlu2 %1035, %v968_v38   ;;  %523 = vperm.xlu1 %1034, %v918_v39  }
  0x71   : > { %374 = vperm.xlu0 %1033, %v855_v40  }
  0x72   : > { %v1144_v41 = vpop.permute.xlu2 %232 }
  0x73   : > { %vm269_vm11 = vcmp.eq.s32.totalorder %v1144_v41, %v1189_v16 }
  0x78   : > { %517 = vperm.xlu2 %1035, %v916_v42   ;;  %659 = vperm.xlu1 %1034, %v967_v43  }
  0x79   : > { %520 = vperm.xlu0 %1033, %v917_v44  }
  0x7a   : > { %v1149_v45 = vpop.permute.xlu2 %241 }
  0x7b   : > { %vm272_vm7 = vcmp.eq.s32.totalorder %v1149_v45, %v1189_v16 }
  0x80   : > { %653 = vperm.xlu2 %1035, %v965_v46   ;;  %514 = vperm.xlu1 %1034, %v915_v47  }
  0x81   : > { %656 = vperm.xlu0 %1033, %v966_v48  }
  0x82   : > { %v1154_v49 = vpop.permute.xlu2 %250  ;;  %v1156_v50 = vpop.permute.xlu1 %223 }
  0x83   : > { %v1158_v51 = vpop.permute.xlu0 %217  ;;  %vm275_vm4 = vcmp.eq.s32.totalorder %v1154_v49, %v1189_v16  ;;  %vm266_vm15 = vcmp.eq.s32.totalorder %v1156_v50, %v1189_v16 }
  0x88   : > { %508 = vperm.xlu2 %1035, %v913_v52   ;;  %650 = vperm.xlu1 %1034, %v964_v53  }
  0x89   : > { %511 = vperm.xlu0 %1033, %v914_v54  }
  0x8a   : > { %v260_v55 = vpop.permute.xlu2 %259  ;;  %v1163_v56 = vpop.permute.xlu1 %226 }
  0x8b   : > { %v1165_v57 = vpop.permute.xlu0 %220  ;;  %vm278_vm1 = vcmp.eq.s32.totalorder %v260_v55, %v1189_v16  ;;  %vm267_vm14 = vcmp.eq.s32.totalorder %v1163_v56, %v1189_v16 }
  0x90   : > { %644 = vperm.xlu2 %1035, %v962_v58   ;;  %505 = vperm.xlu1 %1034, %v912_v59   ;;  %v857_v58 = vld [vmem:[%s1339_s22 + $0x8] sm:$0xff]  ;;  %v213_v59 = vld [vmem:[%s1339_s22] sm:$0xff] }
  0x91   : > { %647 = vperm.xlu0 %1033, %v963_v60  }
  0x92   : > { %v1170_v61 = vpop.permute.xlu2 %335  ;;  %v1172_v62 = vpop.permute.xlu1 %238 }
  0x93   : > { %v1174_v63 = vpop.permute.xlu0 %235  ;;  %vm271_vm9 = vcmp.eq.s32.totalorder %v1172_v62, %v1189_v16 }
  0x94   : > { %vm270_vm10 = vcmp.eq.s32.totalorder %v1174_v63, %v1189_v16 }
  0x98   : > { %499 = vperm.xlu2 %1035, %v910_v0   ;;  %641 = vperm.xlu1 %1034, %v961_v1  }
  0x99   : > { %502 = vperm.xlu0 %1033, %v911_v2  }
  0x9a   : > { %v1179_v3 = vpop.permute.xlu2 %344  ;;  %v248_v4 = vpop.permute.xlu1 %247 }
  0x9b   : > { %v245_v5 = vpop.permute.xlu0 %244  ;;  %vm274_vm5 = vcmp.eq.s32.totalorder %v248_v4, %v1189_v16 }
  0x9c   : > { %vm273_vm6 = vcmp.eq.s32.totalorder %v245_v5, %v1189_v16 }
  0xa0   : > { %635 = vperm.xlu2 %1035, %v959_v6   ;;  %496 = vperm.xlu1 %1034, %v909_v7   ;;  %v971_v7 = vld [vmem:[%s1339_s22 + $0x18] sm:$0xff] }
  0xa1   : > { %638 = vperm.xlu0 %1033, %v960_v8  }
  0xa2   : > { %v1184_v9 = vpop.permute.xlu2 %353  ;;  %v257_v10 = vpop.permute.xlu1 %256 }
  0xa3   : > { %v254_v11 = vpop.permute.xlu0 %253  ;;  %vm277_vm2 = vcmp.eq.s32.totalorder %v257_v10, %v1189_v16 }
  0xa4   : > { %vm276_vm3 = vcmp.eq.s32.totalorder %v254_v11, %v1189_v16 }
  0xa8   : > { %490 = vperm.xlu2 %1035, %v907_v12   ;;  %632 = vperm.xlu1 %1034, %v958_v13  }
  0xa9   : > { %493 = vperm.xlu0 %1033, %v908_v15  }
  0xaa   : > { %v1191_v17 = vpop.permute.xlu2 %362  ;;  %v1193_v18 = vpop.permute.xlu1 %332 }
  0xab   : > { %v263_v19 = vpop.permute.xlu0 %262 }
  0xac   : > { %vm279_vm0 = vcmp.eq.s32.totalorder %v263_v19, %v1189_v16 }
  0xad   : > { %890 = vmatpush.msk.msra.mxu1 %vm279_vm0, %v1061_v20  ;;  %vm265_vm0 = vcmp.eq.s32.totalorder %v1165_v57, %v1189_v16 }
  0xaf   : > { %891 = vmatpush.msk.msra.mxu1 %vm278_vm1, %v1061_v20  ;;  %vm264_vm1 = vcmp.eq.s32.totalorder %v1158_v51, %v1189_v16 }
  0xb0   : > { %626 = vperm.xlu2 %1035, %v956_v21   ;;  %487 = vperm.xlu1 %1034, %v906_v22  }
  0xb1   : > { %629 = vperm.xlu0 %1033, %v957_v23   ;;  %892 = vmatpush.msk.msra.mxu1 %vm277_vm2, %v1061_v20 }
  0xb2   : > { %v1205_v24 = vpop.permute.xlu2 %371  ;;  %v1207_v25 = vpop.permute.xlu1 %341 }
  0xb3   : > { %893 = vmatpush.msk.msra.mxu1 %vm276_vm3, %v1061_v20  ;;  %v1210_v26 = vpop.permute.xlu0 %338 }
  0xb5   : > { %894 = vmatpush.msk.msra.mxu1 %vm275_vm4, %v1061_v20 }
  0xb7   : > { %895 = vmatpush.msk.msra.mxu1 %vm274_vm5, %v1061_v20 }
  0xb9   : > { %623 = vperm.xlu0 %1033, %v955_v27   ;;  %896 = vmatpush.msk.msra.mxu1 %vm273_vm6, %v1061_v20 }
  0xba   : > { %v669_v28 = vpop.permute.xlu2 %668  ;;  %v1222_v29 = vpop.permute.xlu1 %350 }
  0xbb   : > { %897 = vmatpush.msk.msra.mxu1 %vm272_vm7, %v1061_v20  ;;  %v1225_v30 = vpop.permute.xlu0 %347  ;;  %vm685_vm8 = vcmp.eq.s32.totalorder %v669_v28, %v1189_v16 }
  0xbc   : > { %988 = vmatpush.msk.msra.mxu3 %vm685_vm8, %v1061_v20 }
  0xbd   : > { %898 = vmatpush.msk.msra.mxu1 %vm271_vm9, %v1061_v20  ;;  %vm392_vm9 = vcmp.eq.s32.totalorder %v1205_v24, %v1189_v16 }
  0xbf   : > { %899 = vmatpush.msk.msra.mxu1 %vm270_vm10, %v1061_v20 }
  0xc1   : > { %900 = vmatpush.msk.msra.mxu1 %vm269_vm11, %v1061_v20 }
  0xc2   : > { %v666_v31 = vpop.permute.xlu2 %665  ;;  %v360_v32 = vpop.permute.xlu1 %359 }
  0xc3   : > { %vm684_vm13 = vcmp.eq.s32.totalorder %v666_v31, %v1189_v16  ;;  %901 = vmatpush.msk.msra.mxu1 %vm268_vm12, %v1061_v20  ;;  %v357_v33 = vpop.permute.xlu0 %356 }
  0xc4   : > { %989 = vmatpush.msk.msra.mxu3 %vm684_vm13, %v1061_v20  ;;  %vm389_vm13 = vcmp.eq.s32.totalorder %v1191_v17, %v1189_v16 }
  0xc5   : > { %902 = vmatpush.msk.msra.mxu1 %vm267_vm14, %v1061_v20 }
  0xc7   : > { %903 = vmatpush.msk.msra.mxu1 %vm266_vm15, %v1061_v20  ;;  %vm388_vm15 = vcmp.eq.s32.totalorder %v360_v32, %v1189_v16 }
  0xc9   : > { %904 = vmatpush.msk.msra.mxu1 %vm265_vm0, %v1061_v20 }
  0xca   : > { %v663_v34 = vpop.permute.xlu2 %662  ;;  %v369_v35 = vpop.permute.xlu1 %368 }
  0xcb   : > { %vm683_vm2 = vcmp.eq.s32.totalorder %v663_v34, %v1189_v16  ;;  %905 = vmatpush.msk.msra.mxu1 %vm264_vm1, %v1061_v20  ;;  %v366_v36 = vpop.permute.xlu0 %365  ;;  %vm391_vm10 = vcmp.eq.s32.totalorder %v369_v35, %v1189_v16  ;;  %vm387_vm1 = vcmp.eq.s32.totalorder %v357_v33, %v1189_v16 }
  0xcc   : > { %990 = vmatpush.msk.msra.mxu3 %vm683_vm2, %v1061_v20  ;;  %vm390_vm11 = vcmp.eq.s32.totalorder %v366_v36, %v1189_v16  ;;  %vm386_vm2 = vcmp.eq.s32.totalorder %v1184_v9, %v1189_v16  ;;  %463 = vmatmul.f32.vlgmr.msra.gmra.mxu1 %v213_v59 }
  0xd2   : > { %v530_v37 = vpop.permute.xlu1 %529  ;;  %v518_v41 = vpop.permute.xlu2 %517 }
  0xd3   : > { %v533_v38 = vpop.permute.xlu0 %532  ;;  %vm548_vm4 = vcmp.eq.s32.totalorder %v530_v37, %v1189_v16  ;;  %vm544_vm0 = vcmp.eq.s32.totalorder %v518_v41, %v1189_v16 }
  0xd4   : > { %vm549_vm3 = vcmp.eq.s32.totalorder %v533_v38, %v1189_v16 }
  0xd5   : > { %939 = vmatpush.msk.msra.mxu2 %vm549_vm3, %v1061_v20 }
  0xd7   : > { %940 = vmatpush.msk.msra.mxu2 %vm548_vm4, %v1061_v20  ;;  %vm385_vm4 = vcmp.eq.s32.totalorder %v1222_v29, %v1189_v16 }
  0xda   : > { %v527_v39 = vpop.permute.xlu1 %526  ;;  %v654_v44 = vpop.permute.xlu2 %653 }
  0xdb   : > { %vm547_vm5 = vcmp.eq.s32.totalorder %v527_v39, %v1189_v16  ;;  %v378_v40 = vpop.permute.xlu0 %377 }
  0xdc   : > { %vm394_vm6 = vcmp.eq.s32.totalorder %v378_v40, %v1189_v16  ;;  %941 = vmatpush.msk.msra.mxu2 %vm547_vm5, %v1061_v20 }
  0xdd   : > { %874 = vmatpush.msk.msra.mxu0 %vm394_vm6, %v1061_v20  ;;  %vm384_vm6 = vcmp.eq.s32.totalorder %v1225_v30, %v1189_v16 }
  0xe2   : > { %v524_v42 = vpop.permute.xlu1 %523  ;;  %v509_v47 = vpop.permute.xlu2 %508 }
  0xe3   : > { %vm546_vm7 = vcmp.eq.s32.totalorder %v524_v42, %v1189_v16  ;;  %v375_v43 = vpop.permute.xlu0 %374 }
  0xe4   : > { %vm393_vm8 = vcmp.eq.s32.totalorder %v375_v43, %v1189_v16  ;;  %942 = vmatpush.msk.msra.mxu2 %vm546_vm7, %v1061_v20  ;;  %vm680_vm7 = vcmp.eq.s32.totalorder %v654_v44, %v1189_v16 }
  0xe5   : > { %875 = vmatpush.msk.msra.mxu0 %vm393_vm8, %v1061_v20  ;;  %vm383_vm8 = vcmp.eq.s32.totalorder %v1179_v3, %v1189_v16  ;;  %v922_v3 = vld [vmem:[%s1339_s22 + $0x10] sm:$0xff] }
  0xe7   : > { %876 = vmatpush.msk.msra.mxu0 %vm392_vm9, %v1061_v20  ;;  %vm382_vm9 = vcmp.eq.s32.totalorder %v1207_v25, %v1189_v16 }
  0xe9   : > { %877 = vmatpush.msk.msra.mxu0 %vm391_vm10, %v1061_v20 }
  0xea   : > { %v660_v45 = vpop.permute.xlu1 %659  ;;  %v645_v51 = vpop.permute.xlu2 %644 }
  0xeb   : > { %vm682_vm12 = vcmp.eq.s32.totalorder %v660_v45, %v1189_v16  ;;  %878 = vmatpush.msk.msra.mxu0 %vm390_vm11, %v1061_v20  ;;  %v521_v46 = vpop.permute.xlu0 %520  ;;  %vm381_vm11 = vcmp.eq.s32.totalorder %v1210_v26, %v1189_v16 }
  0xec   : > { %vm545_vm14 = vcmp.eq.s32.totalorder %v521_v46, %v1189_v16  ;;  %991 = vmatpush.msk.msra.mxu3 %vm682_vm12, %v1061_v20 }
  0xed   : > { %879 = vmatpush.msk.msra.mxu0 %vm389_vm13, %v1061_v20  ;;  %943 = vmatpush.msk.msra.mxu2 %vm545_vm14, %v1061_v20  ;;  %vm380_vm13 = vcmp.eq.s32.totalorder %v1170_v61, %v1189_v16  ;;  %vm541_vm14 = vcmp.eq.s32.totalorder %v509_v47, %v1189_v16 }
  0xef   : > { %880 = vmatpush.msk.msra.mxu0 %vm388_vm15, %v1061_v20  ;;  %944 = vmatpush.msk.msra.mxu2 %vm544_vm0, %v1061_v20  ;;  %vm379_vm15 = vcmp.eq.s32.totalorder %v1193_v18, %v1189_v16 }
  0xf1   : > { %881 = vmatpush.msk.msra.mxu0 %vm387_vm1, %v1061_v20 }
  0xf2   : > { %v515_v48 = vpop.permute.xlu1 %514  ;;  %v500_v55 = vpop.permute.xlu2 %499 }
  0xf3   : > { %vm543_vm3 = vcmp.eq.s32.totalorder %v515_v48, %v1189_v16  ;;  %882 = vmatpush.msk.msra.mxu0 %vm386_vm2, %v1061_v20  ;;  %v657_v49 = vpop.permute.xlu0 %656  ;;  %vm677_vm2 = vcmp.eq.s32.totalorder %v645_v51, %v1189_v16 }
  0xf4   : > { %vm681_vm5 = vcmp.eq.s32.totalorder %v657_v49, %v1189_v16  ;;  %945 = vmatpush.msk.msra.mxu2 %vm543_vm3, %v1061_v20 }
  0xf5   : > { %883 = vmatpush.msk.msra.mxu0 %vm385_vm4, %v1061_v20  ;;  %992 = vmatpush.msk.msra.mxu3 %vm681_vm5, %v1061_v20  ;;  %vm538_vm5 = vcmp.eq.s32.totalorder %v500_v55, %v1189_v16 }
  0xf7   : > { %884 = vmatpush.msk.msra.mxu0 %vm384_vm6, %v1061_v20  ;;  %993 = vmatpush.msk.msra.mxu3 %vm680_vm7, %v1061_v20 }
  0xf9   : > { %885 = vmatpush.msk.msra.mxu0 %vm383_vm8, %v1061_v20 }
  0xfa   : > { %v651_v50 = vpop.permute.xlu1 %650  ;;  %v636_v60 = vpop.permute.xlu2 %635 }
  0xfb   : > { %vm679_vm10 = vcmp.eq.s32.totalorder %v651_v50, %v1189_v16  ;;  %886 = vmatpush.msk.msra.mxu0 %vm382_vm9, %v1061_v20  ;;  %v512_v52 = vpop.permute.xlu0 %511  ;;  %vm674_vm8 = vcmp.eq.s32.totalorder %v636_v60, %v1189_v16 }
  0xfc   : > { %vm542_vm12 = vcmp.eq.s32.totalorder %v512_v52, %v1189_v16  ;;  %994 = vmatpush.msk.msra.mxu3 %vm679_vm10, %v1061_v20 }
  0xfd   : > { %887 = vmatpush.msk.msra.mxu0 %vm381_vm11, %v1061_v20  ;;  %946 = vmatpush.msk.msra.mxu2 %vm542_vm12, %v1061_v20 }
  0xff   : > { %888 = vmatpush.msk.msra.mxu0 %vm380_vm13, %v1061_v20  ;;  %947 = vmatpush.msk.msra.mxu2 %vm541_vm14, %v1061_v20 }
 0x101   : > { %889 = vmatpush.msk.msra.mxu0 %vm379_vm15, %v1061_v20 }
 0x102   : > { %v506_v53 = vpop.permute.xlu1 %505  ;;  %443 = vmatmul.f32.vlgmr.msra.gmra.mxu0 %v857_v58  ;;  %v491_v63 = vpop.permute.xlu2 %490 }
 0x103   : > { %vm540_vm0 = vcmp.eq.s32.totalorder %v506_v53, %v1189_v16  ;;  %v648_v54 = vpop.permute.xlu0 %647  ;;  %vm535_vm11 = vcmp.eq.s32.totalorder %v491_v63, %v1189_v16 }
 0x104   : > { %vm678_vm1 = vcmp.eq.s32.totalorder %v648_v54, %v1189_v16  ;;  %948 = vmatpush.msk.msra.mxu2 %vm540_vm0, %v1061_v20 }
 0x105   : > { %995 = vmatpush.msk.msra.mxu3 %vm678_vm1, %v1061_v20 }
 0x107   : > { %996 = vmatpush.msk.msra.mxu3 %vm677_vm2, %v1061_v20 }
 0x10a   : > { %v642_v56 = vpop.permute.xlu1 %641  ;;  %v627_v4 = vpop.permute.xlu2 %626 }
 0x10b   : > { %vm676_vm3 = vcmp.eq.s32.totalorder %v642_v56, %v1189_v16  ;;  %v503_v57 = vpop.permute.xlu0 %502  ;;  %vm671_vm14 = vcmp.eq.s32.totalorder %v627_v4, %v1189_v16 }
 0x10c   : > { %vm539_vm4 = vcmp.eq.s32.totalorder %v503_v57, %v1189_v16  ;;  %997 = vmatpush.msk.msra.mxu3 %vm676_vm3, %v1061_v20 }
 0x10d   : > { %949 = vmatpush.msk.msra.mxu2 %vm539_vm4, %v1061_v20 }
 0x10f   : > { %950 = vmatpush.msk.msra.mxu2 %vm538_vm5, %v1061_v20 }
 0x112   : > { %v497_v61 = vpop.permute.xlu1 %496 }
 0x113   : > { %vm537_vm6 = vcmp.eq.s32.totalorder %v497_v61, %v1189_v16  ;;  %v639_v62 = vpop.permute.xlu0 %638 }
 0x114   : > { %vm675_vm7 = vcmp.eq.s32.totalorder %v639_v62, %v1189_v16  ;;  %951 = vmatpush.msk.msra.mxu2 %vm537_vm6, %v1061_v20 }
 0x115   : > { %998 = vmatpush.msk.msra.mxu3 %vm675_vm7, %v1061_v20 }
 0x117   : > { %999 = vmatpush.msk.msra.mxu3 %vm674_vm8, %v1061_v20 }
 0x11a   : > { %v633_v0 = vpop.permute.xlu1 %632 }
 0x11b   : > { %vm673_vm9 = vcmp.eq.s32.totalorder %v633_v0, %v1189_v16  ;;  %v494_v1 = vpop.permute.xlu0 %493 }
 0x11c   : > { %vm536_vm10 = vcmp.eq.s32.totalorder %v494_v1, %v1189_v16  ;;  %1000 = vmatpush.msk.msra.mxu3 %vm673_vm9, %v1061_v20 }
 0x11d   : > { %952 = vmatpush.msk.msra.mxu2 %vm536_vm10, %v1061_v20 }
 0x11f   : > { %953 = vmatpush.msk.msra.mxu2 %vm535_vm11, %v1061_v20 }
 0x122   : > { %v488_v2 = vpop.permute.xlu1 %487 }
 0x123   : > { %vm534_vm12 = vcmp.eq.s32.totalorder %v488_v2, %v1189_v16  ;;  %v630_v5 = vpop.permute.xlu0 %629 }
 0x124   : > { %vm672_vm13 = vcmp.eq.s32.totalorder %v630_v5, %v1189_v16  ;;  %954 = vmatpush.msk.msra.mxu2 %vm534_vm12, %v1061_v20 }
 0x125   : > { %1001 = vmatpush.msk.msra.mxu3 %vm672_vm13, %v1061_v20  ;;  %598 = vmatmul.f32.vlgmr.msra.gmra.mxu2 %v922_v3 }
 0x127   : > { %1002 = vmatpush.msk.msra.mxu3 %vm671_vm14, %v1061_v20 }
 0x12b   : > { %v624_v6 = vpop.permute.xlu0 %623 }
 0x12c   : > { %vm670_vm15 = vcmp.eq.s32.totalorder %v624_v6, %v1189_v16 }
 0x12d   : > { %1003 = vmatpush.msk.msra.mxu3 %vm670_vm15, %v1061_v20 }
 0x12e   : > { %734 = vmatmul.f32.vlgmr.msra.gmra.mxu3 %v971_v7 }
 0x149   : > { %v464_v9 = vpop.f32.mrf.mxu1 }
 0x17f   : > { %v444_v8 = vpop.f32.mrf.mxu0 }
 0x180   : > { %v465_v10 = vadd.f32 %v464_v9, %v444_v8 }
 0x1a8   : > { %v599_v11 = vpop.f32.mrf.mxu2 }
 0x1a9   : > { %v602_v12 = vadd.f32 %v599_v11, %v465_v10 }
 0x1b1   : > { %v735_v13 = vpop.f32.mrf.mxu3 }
 0x1b2   : > { %v738_v14 = vadd.f32 %v735_v13, %v602_v12 }
 0x1b4   : > { %741 = vst [vmem:[%s191_s26] sm:$0xff] %v738_v14 }
 0x1b5 PF: > { %s12_s11 = sadd.s32 1, %s1058_s11   ;;  %s1384_s9 = smov %s1054_s10 }
 0x1b6   : > { %p9_p7 = scmp.ge.s32.totalorder %s12_s11, 4   ;;  %s1385_s10 = smov %s1387_s12 }
 0x1b8   :  { %11 = sbr.rel (!%p9_p7) target bundleno = 2 (0x2), region = 71 }

</bundles_post_ra>
